<compile_context>
chip_gen: v5e
topology: v5e:2x2
jax: 0.10.0
libtpu: 0.0.40
codegen_flags: <defaults>
</compile_context>

<pallas_src>
import math

import jax
import jax.numpy as jnp
from jax.experimental import pallas as pl
from jax.experimental.pallas import tpu as pltpu


def _round_up(x, m):
    return ((x + m - 1) // m) * m


def _pick_k_tile(k, tk_max):
    """Pick a K tile dividing the (possibly padded) K extent.

    Returns (tk, k_pad). k_pad == k whenever k fits in one tile or k is a
    multiple of 128, so the common case needs NO padded copy of x in HBM.
    """
    if k <= tk_max:
        return k, k  # single reduction step; block dim == full array dim
    k_pad = _round_up(k, 128)
    q = k_pad // 128
    d_max = max(tk_max // 128, 1)
    for d in range(d_max, 0, -1):
        if q % d == 0:
            return 128 * d, k_pad
    return 128, k_pad


def _spa_kernel_f32(x_ref, w_ref, b_ref, o_ref):
    """f32 output: accumulate directly into the VMEM-resident output block."""
    kk = pl.program_id(1)

    @pl.when(kk == 0)
    def _():
        o_ref[...] = jnp.zeros_like(o_ref)

    o_ref[...] += jnp.dot(
        x_ref[...], w_ref[...], preferred_element_type=jnp.float32
    )

    @pl.when(kk == pl.num_programs(1) - 1)
    def _():
        o_ref[...] += b_ref[...].astype(o_ref.dtype)


def _spa_kernel_acc(x_ref, w_ref, b_ref, o_ref, acc_ref):
    """Non-f32 output: f32 scratch accumulator, cast once at the end."""
    kk = pl.program_id(1)

    @pl.when(kk == 0)
    def _():
        acc_ref[...] = jnp.zeros_like(acc_ref)

    acc_ref[...] += jnp.dot(
        x_ref[...], w_ref[...], preferred_element_type=jnp.float32
    )

    @pl.when(kk == pl.num_programs(1) - 1)
    def _():
        o_ref[...] = (
            acc_ref[...] + b_ref[...].astype(jnp.float32)
        ).astype(o_ref.dtype)


def spa_forward(x, weight, bias, out_size, *, tm_max=512, tk_max=4096):
    """SPA forward.

    x:      (B, C, W, H)
    weight: (out_size**2, W*H)   -- nn.Linear weight layout
    bias:   (out_size**2,)
    returns (B, C, out_size, out_size)
    """
    b, c, w, h = x.shape
    k = w * h
    n = out_size * out_size
    assert weight.shape == (n, k)
    assert bias.shape == (n,)

    m = b * c
    dtype = x.dtype

    # (B, C, W, H) -> (B*C, W*H): free reshape, NO padded copy of x in HBM.
    x2d = x.reshape(m, k)

    tk, k_pad = _pick_k_tile(k, tk_max)
    if k_pad != k:
        # Rare fallback: large K that is not a multiple of 128.
        # TODO(synk): mask the ragged last K tile in-kernel instead of copying.
        x2d = jnp.zeros((m, k_pad), dtype).at[:, :k].set(x2d)
        w_t = jnp.zeros((k_pad, n), weight.dtype).at[:k, :].set(weight.T)
    else:
        w_t = weight.T  # (k, n); tiny (k*n elements), unpadded in N
    b2d = bias.reshape(1, n)

    # Row tile: multiple of 8 sublanes; when there is enough work, guarantee
    # at least two M blocks so both v7x TensorCores get a share of the
    # "parallel" axis.  No M padding in HBM -- Pallas handles ragged edges
    # and any garbage rows are never written back past row m.
    if m >= 16:
        tm = min(tm_max, _round_up((m + 1) // 2, 8))
    else:
        tm = _round_up(m, 8)

    grid = (pl.cdiv(m, tm), k_pad // tk)

    itemsize = jnp.dtype(dtype).itemsize
    cost = pl.CostEstimate(
        flops=2 * m * k * n,
        transcendentals=0,
        bytes_accessed=(
            m * k * itemsize
            + k * n * jnp.dtype(weight.dtype).itemsize
            + n * jnp.dtype(bias.dtype).itemsize
            + m * n * itemsize
        ),
    )

    out_is_f32 = jnp.dtype(dtype) == jnp.dtype(jnp.float32)
    kernel = _spa_kernel_f32 if out_is_f32 else _spa_kernel_acc
    scratch = [] if out_is_f32 else [pltpu.VMEM((tm, n), jnp.float32)]

    y2d = pl.pallas_call(
        kernel,
        out_shape=jax.ShapeDtypeStruct((m, n), dtype),
        grid=grid,
        in_specs=[
            # x tile walks the row axis and the reduction axis (dominant HBM
            # traffic; software-pipelined / double-buffered).
            pl.BlockSpec((tm, tk), lambda i, kk: (i, kk)),
            # weight tile walks the reduction axis only; UNPADDED in N.
            pl.BlockSpec((tk, n), lambda i, kk: (kk, 0)),
            # bias is constant across the grid.
            pl.BlockSpec((1, n), lambda i, kk: (0, 0)),
        ],
        # Output block index ignores kk -> stays VMEM-resident across the
        # reduction; used directly as the f32 accumulator when dtype==f32.
        out_specs=pl.BlockSpec((tm, n), lambda i, kk: (i, 0)),
        scratch_shapes=scratch,
        compiler_params=pltpu.CompilerParams(
            dimension_semantics=("parallel", "arbitrary"),
        ),
        cost_estimate=cost,
    )(x2d, w_t, b2d)

    return y2d.reshape(b, c, out_size, out_size)


def init_spa_params(key, img, out=1, dtype=jnp.float32):
    """Deterministic init matching nn.Linear(img**2, out**2) default init."""
    k_in = img * img
    n_out = out * out
    bound = 1.0 / math.sqrt(k_in)
    kw, kb = jax.random.split(key)
    weight = jax.random.uniform(kw, (n_out, k_in), dtype, -bound, bound)
    bias = jax.random.uniform(kb, (n_out,), dtype, -bound, bound)
    return weight, bias


if __name__ == "__main__":
    # Small shapes consistent with the module: B=2, C=4, spatial 16x16, out=1.
    B, C, IMG, OUT = 2, 4, 16, 1

    key = jax.random.PRNGKey(0)
    kx, kp = jax.random.split(key)

    x = jax.random.normal(kx, (B, C, IMG, IMG), jnp.float32)
    weight, bias = init_spa_params(kp, IMG, OUT)

    y = spa_forward(x, weight, bias, OUT)
    y = jax.block_until_ready(y)

    # Reference check against plain-JAX linear.
    ref = (x.reshape(B * C, IMG * IMG) @ weight.T + bias).reshape(B, C, OUT, OUT)
    assert y.shape == (B, C, OUT, OUT)
    assert jnp.allclose(y, ref, atol=1e-5, rtol=1e-5)

    print("KERNEL_OK")
</pallas_src>

<mosaic_0001>
module attributes {stable_mosaic.version = 11 : i64} {
  func.func @_spa_kernel_f32(%arg0: i32, %arg1: i32, %arg2: memref<8x256xf32, #tpu.memory_space<vmem>>, %arg3: memref<256x1xf32, #tpu.memory_space<vmem>>, %arg4: memref<1x1xf32, #tpu.memory_space<vmem>>, %arg5: memref<8x1xf32, #tpu.memory_space<vmem>>) attributes {dimension_semantics = [#tpu.dimension_semantics<parallel>, #tpu.dimension_semantics<arbitrary>], iteration_bounds = array<i64: 1, 1>, scalar_prefetch = 0 : i64, scratch_operands = 0 : i64, tpu.core_type = #tpu.core_type<tc>, window_params = [{transform_indices = @transform_0, window_bounds = array<i64: 8, 256>}, {transform_indices = @transform_1, window_bounds = array<i64: 256, 1>}, {pipeline_mode = #tpu.pipeline_mode<synchronous>, transform_indices = @transform_2, window_bounds = array<i64: 1, 1>}, {transform_indices = @transform_3, window_bounds = array<i64: 8, 1>}]} {
    %c0_i32 = arith.constant 0 : i32
    %0 = arith.cmpi eq, %arg1, %c0_i32 : i32
    %1 = arith.extui %0 : i1 to i32
    %c0_i32_0 = arith.constant 0 : i32
    %2 = arith.cmpi ne, %1, %c0_i32_0 : i32
    scf.if %2 {
      %cst_10 = arith.constant 0.000000e+00 : f32
      %12 = vector.broadcast %cst_10 : f32 to vector<8x1xf32>
      %c0_11 = arith.constant 0 : index
      %c0_12 = arith.constant 0 : index
      %13 = vector.load %arg5[%c0_11, %c0_12] : memref<8x1xf32, #tpu.memory_space<vmem>>, vector<8x1xf32>
      tpu.vector_store %arg5[%c0_11, %c0_12], %12 {strides = array<i32>} : memref<8x1xf32, #tpu.memory_space<vmem>>, vector<8x1xf32>,
    } else {
    }
    %c0 = arith.constant 0 : index
    %c0_1 = arith.constant 0 : index
    %3 = vector.load %arg5[%c0, %c0_1] : memref<8x1xf32, #tpu.memory_space<vmem>>, vector<8x1xf32>
    %c0_2 = arith.constant 0 : index
    %c0_3 = arith.constant 0 : index
    %4 = vector.load %arg2[%c0_2, %c0_3] : memref<8x256xf32, #tpu.memory_space<vmem>>, vector<8x256xf32>
    %c0_4 = arith.constant 0 : index
    %c0_5 = arith.constant 0 : index
    %5 = vector.load %arg3[%c0_4, %c0_5] : memref<256x1xf32, #tpu.memory_space<vmem>>, vector<256x1xf32>
    %cst = arith.constant dense<0.000000e+00> : vector<8x1xf32>
    %6 = tpu.matmul %4, %5, %cst {dimension_numbers = #tpu.dot_dimension_numbers<[1], [0], [0], [1], [0, 0, 1, 1], [], []>} : vector<8x256xf32>, vector<256x1xf32>, vector<8x1xf32> -> vector<8x1xf32>
    %7 = arith.addf %3, %6 : vector<8x1xf32>
    %c0_6 = arith.constant 0 : index
    %c0_7 = arith.constant 0 : index
    %8 = vector.load %arg5[%c0_6, %c0_7] : memref<8x1xf32, #tpu.memory_space<vmem>>, vector<8x1xf32>
    tpu.vector_store %arg5[%c0_6, %c0_7], %7 {strides = array<i32>} : memref<8x1xf32, #tpu.memory_space<vmem>>, vector<8x1xf32>,
    %c0_i32_8 = arith.constant 0 : i32
    %9 = arith.cmpi eq, %arg1, %c0_i32_8 : i32
    %10 = arith.extui %9 : i1 to i32
    %c0_i32_9 = arith.constant 0 : i32
    %11 = arith.cmpi ne, %10, %c0_i32_9 : i32
    scf.if %11 {
      %c0_10 = arith.constant 0 : index
      %c0_11 = arith.constant 0 : index
      %12 = vector.load %arg5[%c0_10, %c0_11] : memref<8x1xf32, #tpu.memory_space<vmem>>, vector<8x1xf32>
      %c0_12 = arith.constant 0 : index
      %c0_13 = arith.constant 0 : index
      %13 = vector.load %arg4[%c0_12, %c0_13] : memref<1x1xf32, #tpu.memory_space<vmem>>, vector<1x1xf32>
      %14 = vector.broadcast %13 : vector<1x1xf32> to vector<8x1xf32>
      %15 = arith.addf %12, %14 : vector<8x1xf32>
      %c0_14 = arith.constant 0 : index
      %c0_15 = arith.constant 0 : index
      %16 = vector.load %arg5[%c0_14, %c0_15] : memref<8x1xf32, #tpu.memory_space<vmem>>, vector<8x1xf32>
      tpu.vector_store %arg5[%c0_14, %c0_15], %15 {strides = array<i32>} : memref<8x1xf32, #tpu.memory_space<vmem>>, vector<8x1xf32>,
    } else {
    }
    return
  }
  func.func @transform_0(%arg0: i32, %arg1: i32) -> (i32, i32) {
    %c0_i32 = arith.constant 0 : i32
    return %arg0, %arg1 : i32, i32
  }
  func.func @transform_1(%arg0: i32, %arg1: i32) -> (i32, i32) {
    %c0_i32 = arith.constant 0 : i32
    %c0_i32_0 = arith.constant 0 : i32
    return %arg1, %c0_i32 : i32, i32
  }
  func.func @transform_2(%arg0: i32, %arg1: i32) -> (i32, i32) {
    %c0_i32 = arith.constant 0 : i32
    %c0_i32_0 = arith.constant 0 : i32
    %c0_i32_1 = arith.constant 0 : i32
    return %c0_i32, %c0_i32_0 : i32, i32
  }
  func.func @transform_3(%arg0: i32, %arg1: i32) -> (i32, i32) {
    %c0_i32 = arith.constant 0 : i32
    %c0_i32_0 = arith.constant 0 : i32
    return %arg0, %c0_i32 : i32, i32
  }
}

</mosaic_0001>

<bundles_post_ra>
// kernel: tpu_custom_call.1
= control target key start
LH: loop header
LB: loop body
LE: loop exit
PB: predicated region body
PF: predicated region fallthrough
CT: control target
= control target key end

     0   :  { %vm20_vm0 = vcmask 7168   ;;  %v116_v34 = vmov 0.0   ;;  %s257_s1 = inlined_call_operand.vmem [shape: f32[256,1], index: 1, kind: input, shape index: {}]   ;;  %s258_s0 = inlined_call_operand.vmem [shape: f32[8,256], index: 0, kind: input, shape index: {}]   ;;  %s259_s3 = inlined_call_operand.vmem [shape: f32[8,1], index: 3, kind: output, shape index: {}]   ;;  %s260_s2 = inlined_call_operand.<no memory space> [shape: f32[1,1], index: 2, kind: input, shape index: {}]  }
   0x1   :  { %v40_v0 = vld [vmem:[%s257_s1 + $0x78] sm:$0xff]  ;;  %v39_v2 = vld [vmem:[%s257_s1 + $0x70] sm:$0xff]  ;;  %v38_v4 = vld [vmem:[%s257_s1 + $0x68] sm:$0xff]  ;;  %21 = vst.msk [vmem:[%s259_s3] sm:$0xff] %vm20_vm0, %v116_v34 }
   0x2   :  { %v56_v1 = vld [vmem:[%s257_s1 + $0xf8] sm:$0xff]  ;;  %57 = vmatpush.msra.mxu0 %v40_v0  ;;  %v55_v3 = vld [vmem:[%s257_s1 + $0xf0] sm:$0xff]  ;;  %v54_v5 = vld [vmem:[%s257_s1 + $0xe8] sm:$0xff]  ;;  %v8_v35 = vstv %s260_s2 }
   0x3   :  { %77 = vmatpush.msra.mxu1 %v56_v1  ;;  %v37_v6 = vld [vmem:[%s257_s1 + $0x60] sm:$0xff]  ;;  %v36_v8 = vld [vmem:[%s257_s1 + $0x58] sm:$0xff]  ;;  %v35_v10 = vld [vmem:[%s257_s1 + $0x50] sm:$0xff]  ;;  %9 = vst [vmem:[#allocation2] sm:$0x1] %v8_v35 }
   0x4   :  { %58 = vmatpush.msra.mxu0 %v39_v2  ;;  %v53_v7 = vld [vmem:[%s257_s1 + $0xe0] sm:$0xff]  ;;  %v52_v9 = vld [vmem:[%s257_s1 + $0xd8] sm:$0xff]  ;;  %v51_v11 = vld [vmem:[%s257_s1 + $0xd0] sm:$0xff] }
   0x5   :  { %78 = vmatpush.msra.mxu1 %v55_v3  ;;  %v34_v12 = vld [vmem:[%s257_s1 + $0x48] sm:$0xff]  ;;  %v33_v14 = vld [vmem:[%s257_s1 + $0x40] sm:$0xff]  ;;  %v32_v16 = vld [vmem:[%s257_s1 + $0x38] sm:$0xff] }
   0x6   :  { %59 = vmatpush.msra.mxu0 %v38_v4  ;;  %v50_v13 = vld [vmem:[%s257_s1 + $0xc8] sm:$0xff]  ;;  %v49_v15 = vld [vmem:[%s257_s1 + $0xc0] sm:$0xff]  ;;  %v48_v17 = vld [vmem:[%s257_s1 + $0xb8] sm:$0xff] }
   0x7   :  { %79 = vmatpush.msra.mxu1 %v54_v5  ;;  %v31_v18 = vld [vmem:[%s257_s1 + $0x30] sm:$0xff]  ;;  %v30_v20 = vld [vmem:[%s257_s1 + $0x28] sm:$0xff]  ;;  %v29_v22 = vld [vmem:[%s257_s1 + $0x20] sm:$0xff] }
   0x8   :  { %60 = vmatpush.msra.mxu0 %v37_v6  ;;  %v47_v19 = vld [vmem:[%s257_s1 + $0xb0] sm:$0xff]  ;;  %v46_v21 = vld [vmem:[%s257_s1 + $0xa8] sm:$0xff]  ;;  %v45_v23 = vld [vmem:[%s257_s1 + $0xa0] sm:$0xff] }
   0x9   :  { %80 = vmatpush.msra.mxu1 %v53_v7  ;;  %v28_v24 = vld [vmem:[%s257_s1 + $0x18] sm:$0xff]  ;;  %v27_v26 = vld [vmem:[%s257_s1 + $0x10] sm:$0xff]  ;;  %v26_v28 = vld [vmem:[%s257_s1 + $0x8] sm:$0xff] }
   0xa   :  { %61 = vmatpush.msra.mxu0 %v36_v8  ;;  %v44_v25 = vld [vmem:[%s257_s1 + $0x98] sm:$0xff]  ;;  %v43_v27 = vld [vmem:[%s257_s1 + $0x90] sm:$0xff]  ;;  %v42_v29 = vld [vmem:[%s257_s1 + $0x88] sm:$0xff] }
   0xb   :  { %81 = vmatpush.msra.mxu1 %v52_v9  ;;  %v25_v30 = vld [vmem:[%s257_s1] sm:$0xff]  ;;  %v24_v33 = vld [vmem:[%s258_s0 + $0x8] sm:$0xff] }
   0xc   :  { %62 = vmatpush.msra.mxu0 %v35_v10  ;;  %v41_v31 = vld [vmem:[%s257_s1 + $0x80] sm:$0xff] }
   0xd   :  { %82 = vmatpush.msra.mxu1 %v51_v11  ;;  %v23_v32 = vld [vmem:[%s258_s0] sm:$0xff] }
   0xe   :  { %63 = vmatpush.msra.mxu0 %v34_v12  ;;  %v22_v37 = vld [vmem:[%s259_s3] sm:$0xff] }
   0xf   :  { %83 = vmatpush.msra.mxu1 %v50_v13  ;;  %v115_v41 = vld [vmem:[#allocation2] ss:$0 sm:$0xff] }
  0x10   :  { %64 = vmatpush.msra.mxu0 %v33_v14 }
  0x11   :  { %84 = vmatpush.msra.mxu1 %v49_v15 }
  0x12   :  { %65 = vmatpush.msra.mxu0 %v32_v16 }
  0x13   :  { %85 = vmatpush.msra.mxu1 %v48_v17 }
  0x14   :  { %66 = vmatpush.msra.mxu0 %v31_v18 }
  0x15   :  { %86 = vmatpush.msra.mxu1 %v47_v19 }
  0x16   :  { %67 = vmatpush.msra.mxu0 %v30_v20 }
  0x17   :  { %87 = vmatpush.msra.mxu1 %v46_v21 }
  0x18   :  { %68 = vmatpush.msra.mxu0 %v29_v22 }
  0x19   :  { %88 = vmatpush.msra.mxu1 %v45_v23 }
  0x1a   :  { %69 = vmatpush.msra.mxu0 %v28_v24 }
  0x1b   :  { %89 = vmatpush.msra.mxu1 %v44_v25 }
  0x1c   :  { %70 = vmatpush.msra.mxu0 %v27_v26 }
  0x1d   :  { %90 = vmatpush.msra.mxu1 %v43_v27 }
  0x1e   :  { %71 = vmatpush.msra.mxu0 %v26_v28 }
  0x1f   :  { %91 = vmatpush.msra.mxu1 %v42_v29 }
  0x20   :  { %72 = vmatpush.msra.mxu0 %v25_v30 }
  0x21   :  { %92 = vmatpush.msra.mxu1 %v41_v31  ;;  %73 = vmatmul.f32.vlgmr.msra.gmra.mxu0 %v23_v32 }
  0x22   :  { %93 = vmatmul.f32.vlgmr.msra.gmra.mxu1 %v24_v33 }
  0x9e   :  { %v74_v36 = vpop.f32.mrf.mxu0 }
  0x9f   :  { %v94_v38 = vpop.f32.mrf.mxu1 }
  0xa0   :  { %v95_v39 = vadd.f32 %v94_v38, %v74_v36 }
  0xa2   :  { %v97_v40 = vadd.f32 %v95_v39, %v22_v37 }
  0xa4   :  { %99 = vst.msk [vmem:[%s259_s3] sm:$0xff] %vm20_vm0, %v97_v40 }
  0xab   :  { %v103_v42 = vld [vmem:[%s259_s3] sm:$0xff] }
  0xac   :  { %v108_v43 = vadd.f32 %v115_v41, %v103_v42 }
  0xae   :  { %109 = vst.msk [vmem:[%s259_s3] sm:$0xff] %vm20_vm0, %v108_v43 }

</bundles_post_ra>
